<compile_context>
chip_gen: v5e
topology: v5e:2x2
jax: 0.10.0
libtpu: 0.0.40
codegen_flags: <defaults>
</compile_context>

<pallas_src>
import jax
import jax.numpy as jnp
from jax import lax
from jax.experimental import pallas as pl
from jax.experimental.pallas import tpu as pltpu

# Matmul input dtypes. FC (dominant FLOPs) is bf16 on all chips; the recurrence
# defaults to f32 (set to jnp.bfloat16 on v6e/v7x for more MXU headroom).
RNN_MATMUL_DTYPE = jnp.float32
FC_MATMUL_DTYPE = jnp.bfloat16


def _round_up(x, m):
    return (x + m - 1) // m * m


# ---------------------------------------------------------------------------
# Fused kernel: one grid step = Tc time steps of the L-layer tanh recurrence,
# followed by one full-width FC matmul for the whole chunk.
# ---------------------------------------------------------------------------
def _make_charrnn_kernel(n_layers, chunk_len, seq_len_real, seq_len_padded):
    L, Tc = n_layers, chunk_len
    need_mask = seq_len_padded != seq_len_real

    def kernel(x_ref, h0_ref, wih_ref, whh_ref, b_ref, wfc_ref, bfc_ref,
               logits_ref, hN_ref, hbuf_ref):
        c = pl.program_id(0)

        # hN_ref (constant-index output block) is the VMEM-resident recurrent
        # state carried across grid chunks; it is DMA'd to HBM exactly once.
        @pl.when(c == 0)
        def _():
            hN_ref[...] = h0_ref[...]

        def step(t, hs):
            # x_ref[t] already contains x_t @ W_ih[0]^T (folded into the
            # embedding table in the wrapper) => no layer-0 input matmul here.
            inp = x_ref[t]                                        # (Bp, Hp) f32
            cur = None
            new_hs = []
            for l in range(L):
                pre = jnp.dot(hs[l].astype(whh_ref.dtype), whh_ref[l],
                              preferred_element_type=jnp.float32)
                if l == 0:
                    pre = pre + inp + b_ref[0]
                else:
                    pre = (pre
                           + jnp.dot(cur.astype(wih_ref.dtype), wih_ref[l - 1],
                                     preferred_element_type=jnp.float32)
                           + b_ref[l])
                h_new = jnp.tanh(pre)
                if need_mask:
                    # Padded tail steps (t_global >= T) leave the state untouched.
                    h_new = jnp.where(c * Tc + t < seq_len_real, h_new, hs[l])
                new_hs.append(h_new)
                cur = h_new
            # Buffer the top-layer hidden; the FC matmul is deferred so it runs
            # at full MXU width instead of 8 rows per step.
            hbuf_ref[t] = cur
            return tuple(new_hs)

        hs = lax.fori_loop(0, Tc, step, tuple(hN_ref[l] for l in range(L)))
        for l in range(L):
            hN_ref[l] = hs[l]

        # Deferred FC for the whole chunk: (Tc*Bp, Hp) @ (Hp, Vp) + bias,
        # emitted as one lane/sublane-dense (Tc, Bp, Vp) store.
        Bp, Hp = hbuf_ref.shape[1], hbuf_ref.shape[2]
        Vp = logits_ref.shape[2]
        h_flat = hbuf_ref[...].reshape(Tc * Bp, Hp).astype(wfc_ref.dtype)
        logits = (jnp.dot(h_flat, wfc_ref[...], preferred_element_type=jnp.float32)
                  + bfc_ref[...])
        logits_ref[...] = logits.reshape(Tc, Bp, Vp)

    return kernel


# ---------------------------------------------------------------------------
# CharRNN forward: embedding gather + padding/layout glue around the kernel.
# ---------------------------------------------------------------------------
def char_rnn_forward(params, tokens, hidden):
    """tokens: (B, T) int32, hidden: (L, B, H) f32.
    Returns (logits (B*T, V), new_hidden (L, B, H)) matching the PyTorch module."""
    V, H = params["embedding"].shape
    L = params["w_ih"].shape[0]
    B, T = tokens.shape

    f32 = jnp.float32
    Bp = _round_up(max(B, 8), 8)        # sublane-friendly batch
    Hp = _round_up(H, 128)              # lane-friendly hidden
    Vp = _round_up(V, 128)              # lane-friendly vocab

    # Time-chunk size: Tc*Bp >= 128-256 rows for the deferred FC matmul, capped
    # so the double-buffered (Tc,Bp,Hp)+(Tc,Bp,Vp) streaming blocks stay well
    # inside v7x's 64 MiB VMEM.
    Tc = min(32, _round_up(T, 8))
    while Tc > 8 and 2 * Tc * Bp * (Hp + Vp) * 4 > (16 << 20):
        Tc //= 2
    Tp = _round_up(T, Tc)
    num_chunks = Tp // Tc

    # ---- parameter prep (cheap wrapper glue; all pads are zero => exact) ----
    # Fold layer-0's input projection into the embedding table.
    emb_proj = params["embedding"].astype(f32) @ params["w_ih"][0].T.astype(f32)
    emb_proj = jnp.pad(emb_proj, ((0, 0), (0, Hp - H)))                    # (V, Hp)
    if L > 1:
        wih_rest = jnp.pad(
            jnp.transpose(params["w_ih"][1:], (0, 2, 1)).astype(RNN_MATMUL_DTYPE),
            ((0, 0), (0, Hp - H), (0, Hp - H)))                            # (L-1,Hp,Hp)
    else:
        wih_rest = jnp.zeros((1, Hp, Hp), RNN_MATMUL_DTYPE)                # never read
    whh_t = jnp.pad(
        jnp.transpose(params["w_hh"], (0, 2, 1)).astype(RNN_MATMUL_DTYPE),
        ((0, 0), (0, Hp - H), (0, Hp - H)))                                # (L, Hp, Hp)
    # Fused (b_ih + b_hh) and pre-broadcast => no per-step broadcast in-kernel.
    b = jnp.pad((params["b_ih"] + params["b_hh"]).astype(f32),
                ((0, 0), (0, Hp - H)))                                     # (L, Hp)
    b = jnp.broadcast_to(b[:, None, :], (L, Bp, Hp))                       # (L, Bp, Hp)
    wfc_t = jnp.pad(params["w_fc"].T.astype(FC_MATMUL_DTYPE),
                    ((0, Hp - H), (0, Vp - V)))                            # (Hp, Vp)
    bfc = jnp.pad(params["b_fc"].astype(f32)[None, :], ((0, 0), (0, Vp - V)))

    # ---- activations ---------------------------------------------------------
    # nn.Embedding gather (JAX glue) emits the time-major slab directly and
    # already carries the W_ih[0] projection.  Padded time/batch rows are zero.
    x_tbh = jnp.take(emb_proj, tokens.T, axis=0)                           # (T, B, Hp)
    x_tbh = jnp.pad(x_tbh, ((0, Tp - T), (0, Bp - B), (0, 0)))             # (Tp,Bp,Hp)
    h0_p = jnp.pad(hidden.astype(f32), ((0, 0), (0, Bp - B), (0, Hp - H)))

    # VMEM budget: resident weights + double-buffered streaming blocks + scratch.
    nbytes = lambda a: a.size * a.dtype.itemsize
    est = (nbytes(wih_rest) + nbytes(whh_t) + nbytes(b) + nbytes(wfc_t) + nbytes(bfc)
           + 2 * nbytes(h0_p)
           + 2 * Tc * Bp * Hp * 4 + 2 * Tc * Bp * Vp * 4 + Tc * Bp * Hp * 4)
    vmem_limit = int(min(max(2 * est + (8 << 20), 32 << 20), 64 << 20))

    logits_p, hN_p = pl.pallas_call(
        _make_charrnn_kernel(L, Tc, T, Tp),
        grid_spec=pltpu.PrefetchScalarGridSpec(
            num_scalar_prefetch=0,
            grid=(num_chunks,),
            in_specs=[
                pl.BlockSpec((Tc, Bp, Hp), lambda c: (c, 0, 0)),             # x (streamed)
                pl.BlockSpec((L, Bp, Hp), lambda c: (0, 0, 0)),              # h0 (resident)
                pl.BlockSpec((max(L - 1, 1), Hp, Hp), lambda c: (0, 0, 0)),  # W_ih[1:]^T
                pl.BlockSpec((L, Hp, Hp), lambda c: (0, 0, 0)),              # W_hh^T
                pl.BlockSpec((L, Bp, Hp), lambda c: (0, 0, 0)),              # bias
                pl.BlockSpec((Hp, Vp), lambda c: (0, 0)),                    # W_fc^T
                pl.BlockSpec((1, Vp), lambda c: (0, 0)),                     # b_fc
            ],
            out_specs=[
                pl.BlockSpec((Tc, Bp, Vp), lambda c: (c, 0, 0)),             # logits (streamed)
                pl.BlockSpec((L, Bp, Hp), lambda c: (0, 0, 0)),              # hN (resident)
            ],
            scratch_shapes=[pltpu.VMEM((Tc, Bp, Hp), f32)],                  # h_top chunk buffer
        ),
        out_shape=[
            jax.ShapeDtypeStruct((Tp, Bp, Vp), f32),   # per-chunk logits (time-major)
            jax.ShapeDtypeStruct((L, Bp, Hp), f32),    # final hidden state
        ],
        input_output_aliases={1: 1},                   # h0 HBM buffer reused for hN
        compiler_params=pltpu.CompilerParams(
            dimension_semantics=("arbitrary",),
            vmem_limit_bytes=vmem_limit),
    )(x_tbh, h0_p, wih_rest, whh_t, b, wfc_t, bfc)

    # Match output.reshape(B*T, -1) row order (batch-major).
    # TODO(synk): emit logits batch-major from the kernel (needs a dynamic
    # sublane-dim store or in-kernel transpose) to drop this wrapper relayout.
    logits = jnp.transpose(logits_p[:T, :B, :V], (1, 0, 2)).reshape(B * T, V)
    h_new = hN_p[:, :B, :H]
    return logits, h_new


# ---------------------------------------------------------------------------
# Parameters in PyTorch layout, and a pure-JAX reference for verification.
# ---------------------------------------------------------------------------
def init_params(key, vocab_size, hidden_size, n_layers):
    ks = jax.random.split(key, 7)
    s = 1.0 / jnp.sqrt(hidden_size)
    u = lambda k, shape: jax.random.uniform(k, shape, jnp.float32, -s, s)
    return dict(
        embedding=jax.random.normal(ks[0], (vocab_size, hidden_size), jnp.float32),
        w_ih=u(ks[1], (n_layers, hidden_size, hidden_size)),   # (out, in), PyTorch-style
        w_hh=u(ks[2], (n_layers, hidden_size, hidden_size)),
        b_ih=u(ks[3], (n_layers, hidden_size)),
        b_hh=u(ks[4], (n_layers, hidden_size)),
        w_fc=u(ks[5], (vocab_size, hidden_size)),
        b_fc=u(ks[6], (vocab_size,)),
    )


def char_rnn_reference(params, tokens, hidden):
    B, T = tokens.shape
    x = jnp.take(params["embedding"], tokens, axis=0)            # (B, T, H)
    h = hidden
    outs = []
    for t in range(T):
        inp = x[:, t, :]
        new_h = []
        for l in range(h.shape[0]):
            pre = (inp @ params["w_ih"][l].T + params["b_ih"][l]
                   + h[l] @ params["w_hh"][l].T + params["b_hh"][l])
            inp = jnp.tanh(pre)
            new_h.append(inp)
        h = jnp.stack(new_h)
        outs.append(inp)
    out = jnp.stack(outs, axis=1)                                # (B, T, H)
    logits = out.reshape(B * T, -1) @ params["w_fc"].T + params["b_fc"]
    return logits, h


if __name__ == "__main__":
    vocab_size, hidden_size, n_layers = 20, 32, 3
    B, T = 2, 8

    key = jax.random.PRNGKey(0)
    kp, kx = jax.random.split(key)
    params = init_params(kp, vocab_size, hidden_size, n_layers)

    tokens = jax.random.randint(kx, (B, T), 0, vocab_size, dtype=jnp.int32)
    hidden0 = jnp.zeros((n_layers, B, hidden_size), jnp.float32)  # init_hidden

    logits, hidden_new = jax.jit(char_rnn_forward)(params, tokens, hidden0)
    jax.block_until_ready((logits, hidden_new))

    assert logits.shape == (B * T, vocab_size)
    assert hidden_new.shape == (n_layers, B, hidden_size)

    ref_logits, ref_hidden = jax.jit(char_rnn_reference)(params, tokens, hidden0)
    jax.block_until_ready((ref_logits, ref_hidden))
    # Loose tolerance covers MXU f32 emulation differences + bf16 FC inputs.
    assert jnp.allclose(logits, ref_logits, rtol=2e-2, atol=2e-2)
    assert jnp.allclose(hidden_new, ref_hidden, rtol=2e-2, atol=2e-2)

    print("KERNEL_OK")
</pallas_src>

<mosaic_0001>
module attributes {stable_mosaic.version = 11 : i64} {
  func.func @kernel(%arg0: i32, %arg1: memref<8x8x128xf32, #tpu.memory_space<vmem>>, %arg2: memref<3x8x128xf32, #tpu.memory_space<vmem>>, %arg3: memref<2x128x128xf32, #tpu.memory_space<vmem>>, %arg4: memref<3x128x128xf32, #tpu.memory_space<vmem>>, %arg5: memref<3x8x128xf32, #tpu.memory_space<vmem>>, %arg6: memref<128x128xbf16, #tpu.memory_space<vmem>>, %arg7: memref<1x128xf32, #tpu.memory_space<vmem>>, %arg8: memref<8x8x128xf32, #tpu.memory_space<vmem>>, %arg9: memref<3x8x128xf32, #tpu.memory_space<vmem>>, %arg10: memref<8x8x128xf32, #tpu.memory_space<vmem>>) attributes {dimension_semantics = [#tpu.dimension_semantics<arbitrary>], iteration_bounds = array<i64: 1>, scalar_prefetch = 0 : i64, scratch_operands = 1 : i64, tpu.core_type = #tpu.core_type<tc>, window_params = [{transform_indices = @transform_0, window_bounds = array<i64: 8, 8, 128>}, {pipeline_mode = #tpu.pipeline_mode<synchronous>, transform_indices = @transform_1, window_bounds = array<i64: 3, 8, 128>}, {pipeline_mode = #tpu.pipeline_mode<synchronous>, transform_indices = @transform_2, window_bounds = array<i64: 2, 128, 128>}, {pipeline_mode = #tpu.pipeline_mode<synchronous>, transform_indices = @transform_3, window_bounds = array<i64: 3, 128, 128>}, {pipeline_mode = #tpu.pipeline_mode<synchronous>, transform_indices = @transform_4, window_bounds = array<i64: 3, 8, 128>}, {pipeline_mode = #tpu.pipeline_mode<synchronous>, transform_indices = @transform_5, window_bounds = array<i64: 128, 128>}, {pipeline_mode = #tpu.pipeline_mode<synchronous>, transform_indices = @transform_6, window_bounds = array<i64: 1, 128>}, {transform_indices = @transform_7, window_bounds = array<i64: 8, 8, 128>}, {pipeline_mode = #tpu.pipeline_mode<synchronous>, transform_indices = @transform_8, window_bounds = array<i64: 3, 8, 128>}]} {
    %c0_i32 = arith.constant 0 : i32
    %0 = arith.cmpi eq, %arg0, %c0_i32 : i32
    %1 = arith.extui %0 : i1 to i32
    %c0_i32_0 = arith.constant 0 : i32
    %2 = arith.cmpi ne, %1, %c0_i32_0 : i32
    scf.if %2 {
      %c0_28 = arith.constant 0 : index
      %c0_29 = arith.constant 0 : index
      %c0_30 = arith.constant 0 : index
      %30 = vector.load %arg2[%c0_28, %c0_29, %c0_30] : memref<3x8x128xf32, #tpu.memory_space<vmem>>, vector<3x8x128xf32>
      %c0_31 = arith.constant 0 : index
      %c0_32 = arith.constant 0 : index
      %c0_33 = arith.constant 0 : index
      %31 = vector.load %arg9[%c0_31, %c0_32, %c0_33] : memref<3x8x128xf32, #tpu.memory_space<vmem>>, vector<3x8x128xf32>
      tpu.vector_store %arg9[%c0_31, %c0_32, %c0_33], %30 {strides = array<i32>} : memref<3x8x128xf32, #tpu.memory_space<vmem>>, vector<3x8x128xf32>,
    } else {
    }
    %c0 = arith.constant 0 : index
    %c0_1 = arith.constant 0 : index
    %c0_2 = arith.constant 0 : index
    %3 = vector.load %arg9[%c0, %c0_1, %c0_2] : memref<3x8x128xf32, #tpu.memory_space<vmem>>, vector<1x8x128xf32>
    %4 = vector.shape_cast %3 : vector<1x8x128xf32> to vector<8x128xf32>
    %c1 = arith.constant 1 : index
    %c0_3 = arith.constant 0 : index
    %c0_4 = arith.constant 0 : index
    %5 = vector.load %arg9[%c1, %c0_3, %c0_4] : memref<3x8x128xf32, #tpu.memory_space<vmem>>, vector<1x8x128xf32>
    %6 = vector.shape_cast %5 : vector<1x8x128xf32> to vector<8x128xf32>
    %c2 = arith.constant 2 : index
    %c0_5 = arith.constant 0 : index
    %c0_6 = arith.constant 0 : index
    %7 = vector.load %arg9[%c2, %c0_5, %c0_6] : memref<3x8x128xf32, #tpu.memory_space<vmem>>, vector<1x8x128xf32>
    %8 = vector.shape_cast %7 : vector<1x8x128xf32> to vector<8x128xf32>
    %c0_i32_7 = arith.constant 0 : i32
    %c8_i32 = arith.constant 8 : i32
    %9 = arith.addi %c0_i32_7, %c8_i32 : i32
    %c1_i32 = arith.constant 1 : i32
    %10:3 = scf.for %arg11 = %c0_i32_7 to %9 step %c1_i32 iter_args(%arg12 = %4, %arg13 = %6, %arg14 = %8) -> (vector<8x128xf32>, vector<8x128xf32>, vector<8x128xf32>)  : i32 {
      %30 = arith.index_cast %arg11 : i32 to index
      %c0_28 = arith.constant 0 : index
      %c0_29 = arith.constant 0 : index
      %31 = vector.load %arg1[%30, %c0_28, %c0_29] : memref<8x8x128xf32, #tpu.memory_space<vmem>>, vector<1x8x128xf32>
      %32 = vector.shape_cast %31 : vector<1x8x128xf32> to vector<8x128xf32>
      %c0_30 = arith.constant 0 : index
      %c0_31 = arith.constant 0 : index
      %c0_32 = arith.constant 0 : index
      %33 = vector.load %arg4[%c0_30, %c0_31, %c0_32] : memref<3x128x128xf32, #tpu.memory_space<vmem>>, vector<1x128x128xf32>
      %34 = vector.shape_cast %33 : vector<1x128x128xf32> to vector<128x128xf32>
      %cst_33 = arith.constant dense<0.000000e+00> : vector<8x128xf32>
      %35 = tpu.matmul %arg12, %34, %cst_33 {dimension_numbers = #tpu.dot_dimension_numbers<[1], [0], [0], [1], [0, 0, 1, 1], [], []>} : vector<8x128xf32>, vector<128x128xf32>, vector<8x128xf32> -> vector<8x128xf32>
      %36 = arith.addf %35, %32 : vector<8x128xf32>
      %c0_34 = arith.constant 0 : index
      %c0_35 = arith.constant 0 : index
      %c0_36 = arith.constant 0 : index
      %37 = vector.load %arg5[%c0_34, %c0_35, %c0_36] : memref<3x8x128xf32, #tpu.memory_space<vmem>>, vector<1x8x128xf32>
      %38 = vector.shape_cast %37 : vector<1x8x128xf32> to vector<8x128xf32>
      %39 = arith.addf %36, %38 : vector<8x128xf32>
      %40 = math.tanh %39 : vector<8x128xf32>
      %c1_37 = arith.constant 1 : index
      %c0_38 = arith.constant 0 : index
      %c0_39 = arith.constant 0 : index
      %41 = vector.load %arg4[%c1_37, %c0_38, %c0_39] : memref<3x128x128xf32, #tpu.memory_space<vmem>>, vector<1x128x128xf32>
      %42 = vector.shape_cast %41 : vector<1x128x128xf32> to vector<128x128xf32>
      %cst_40 = arith.constant dense<0.000000e+00> : vector<8x128xf32>
      %43 = tpu.matmul %arg13, %42, %cst_40 {dimension_numbers = #tpu.dot_dimension_numbers<[1], [0], [0], [1], [0, 0, 1, 1], [], []>} : vector<8x128xf32>, vector<128x128xf32>, vector<8x128xf32> -> vector<8x128xf32>
      %c0_41 = arith.constant 0 : index
      %c0_42 = arith.constant 0 : index
      %c0_43 = arith.constant 0 : index
      %44 = vector.load %arg3[%c0_41, %c0_42, %c0_43] : memref<2x128x128xf32, #tpu.memory_space<vmem>>, vector<1x128x128xf32>
      %45 = vector.shape_cast %44 : vector<1x128x128xf32> to vector<128x128xf32>
      %cst_44 = arith.constant dense<0.000000e+00> : vector<8x128xf32>
      %46 = tpu.matmul %40, %45, %cst_44 {dimension_numbers = #tpu.dot_dimension_numbers<[1], [0], [0], [1], [0, 0, 1, 1], [], []>} : vector<8x128xf32>, vector<128x128xf32>, vector<8x128xf32> -> vector<8x128xf32>
      %47 = arith.addf %43, %46 : vector<8x128xf32>
      %c1_45 = arith.constant 1 : index
      %c0_46 = arith.constant 0 : index
      %c0_47 = arith.constant 0 : index
      %48 = vector.load %arg5[%c1_45, %c0_46, %c0_47] : memref<3x8x128xf32, #tpu.memory_space<vmem>>, vector<1x8x128xf32>
      %49 = vector.shape_cast %48 : vector<1x8x128xf32> to vector<8x128xf32>
      %50 = arith.addf %47, %49 : vector<8x128xf32>
      %51 = math.tanh %50 : vector<8x128xf32>
      %c2_48 = arith.constant 2 : index
      %c0_49 = arith.constant 0 : index
      %c0_50 = arith.constant 0 : index
      %52 = vector.load %arg4[%c2_48, %c0_49, %c0_50] : memref<3x128x128xf32, #tpu.memory_space<vmem>>, vector<1x128x128xf32>
      %53 = vector.shape_cast %52 : vector<1x128x128xf32> to vector<128x128xf32>
      %cst_51 = arith.constant dense<0.000000e+00> : vector<8x128xf32>
      %54 = tpu.matmul %arg14, %53, %cst_51 {dimension_numbers = #tpu.dot_dimension_numbers<[1], [0], [0], [1], [0, 0, 1, 1], [], []>} : vector<8x128xf32>, vector<128x128xf32>, vector<8x128xf32> -> vector<8x128xf32>
      %c1_52 = arith.constant 1 : index
      %c0_53 = arith.constant 0 : index
      %c0_54 = arith.constant 0 : index
      %55 = vector.load %arg3[%c1_52, %c0_53, %c0_54] : memref<2x128x128xf32, #tpu.memory_space<vmem>>, vector<1x128x128xf32>
      %56 = vector.shape_cast %55 : vector<1x128x128xf32> to vector<128x128xf32>
      %cst_55 = arith.constant dense<0.000000e+00> : vector<8x128xf32>
      %57 = tpu.matmul %51, %56, %cst_55 {dimension_numbers = #tpu.dot_dimension_numbers<[1], [0], [0], [1], [0, 0, 1, 1], [], []>} : vector<8x128xf32>, vector<128x128xf32>, vector<8x128xf32> -> vector<8x128xf32>
      %58 = arith.addf %54, %57 : vector<8x128xf32>
      %c2_56 = arith.constant 2 : index
      %c0_57 = arith.constant 0 : index
      %c0_58 = arith.constant 0 : index
      %59 = vector.load %arg5[%c2_56, %c0_57, %c0_58] : memref<3x8x128xf32, #tpu.memory_space<vmem>>, vector<1x8x128xf32>
      %60 = vector.shape_cast %59 : vector<1x8x128xf32> to vector<8x128xf32>
      %61 = arith.addf %58, %60 : vector<8x128xf32>
      %62 = math.tanh %61 : vector<8x128xf32>
      %63 = arith.index_cast %arg11 : i32 to index
      %c0_59 = arith.constant 0 : index
      %c0_60 = arith.constant 0 : index
      %64 = vector.load %arg10[%63, %c0_59, %c0_60] : memref<8x8x128xf32, #tpu.memory_space<vmem>>, vector<1x8x128xf32>
      %65 = vector.shape_cast %64 : vector<1x8x128xf32> to vector<8x128xf32>
      %66 = vector.shape_cast %62 : vector<8x128xf32> to vector<1x8x128xf32>
      tpu.vector_store %arg10[%63, %c0_59, %c0_60], %66 {strides = array<i32>} : memref<8x8x128xf32, #tpu.memory_space<vmem>>, vector<1x8x128xf32>,
      scf.yield %40, %51, %62 : vector<8x128xf32>, vector<8x128xf32>, vector<8x128xf32>
    }
    %c8_i32_8 = arith.constant 8 : i32
    %c0_9 = arith.constant 0 : index
    %c0_10 = arith.constant 0 : index
    %c0_11 = arith.constant 0 : index
    %11 = vector.load %arg9[%c0_9, %c0_10, %c0_11] : memref<3x8x128xf32, #tpu.memory_space<vmem>>, vector<1x8x128xf32>
    %12 = vector.shape_cast %11 : vector<1x8x128xf32> to vector<8x128xf32>
    %13 = vector.shape_cast %10#0 : vector<8x128xf32> to vector<1x8x128xf32>
    tpu.vector_store %arg9[%c0_9, %c0_10, %c0_11], %13 {strides = array<i32>} : memref<3x8x128xf32, #tpu.memory_space<vmem>>, vector<1x8x128xf32>,
    %c1_12 = arith.constant 1 : index
    %c0_13 = arith.constant 0 : index
    %c0_14 = arith.constant 0 : index
    %14 = vector.load %arg9[%c1_12, %c0_13, %c0_14] : memref<3x8x128xf32, #tpu.memory_space<vmem>>, vector<1x8x128xf32>
    %15 = vector.shape_cast %14 : vector<1x8x128xf32> to vector<8x128xf32>
    %16 = vector.shape_cast %10#1 : vector<8x128xf32> to vector<1x8x128xf32>
    tpu.vector_store %arg9[%c1_12, %c0_13, %c0_14], %16 {strides = array<i32>} : memref<3x8x128xf32, #tpu.memory_space<vmem>>, vector<1x8x128xf32>,
    %c2_15 = arith.constant 2 : index
    %c0_16 = arith.constant 0 : index
    %c0_17 = arith.constant 0 : index
    %17 = vector.load %arg9[%c2_15, %c0_16, %c0_17] : memref<3x8x128xf32, #tpu.memory_space<vmem>>, vector<1x8x128xf32>
    %18 = vector.shape_cast %17 : vector<1x8x128xf32> to vector<8x128xf32>
    %19 = vector.shape_cast %10#2 : vector<8x128xf32> to vector<1x8x128xf32>
    tpu.vector_store %arg9[%c2_15, %c0_16, %c0_17], %19 {strides = array<i32>} : memref<3x8x128xf32, #tpu.memory_space<vmem>>, vector<1x8x128xf32>,
    %c0_18 = arith.constant 0 : index
    %c0_19 = arith.constant 0 : index
    %c0_20 = arith.constant 0 : index
    %20 = vector.load %arg10[%c0_18, %c0_19, %c0_20] : memref<8x8x128xf32, #tpu.memory_space<vmem>>, vector<8x8x128xf32>
    %21 = vector.shape_cast %20 : vector<8x8x128xf32> to vector<64x128xf32>
    %22 = arith.truncf %21 : vector<64x128xf32> to vector<64x128xbf16>
    %c0_21 = arith.constant 0 : index
    %c0_22 = arith.constant 0 : index
    %23 = vector.load %arg6[%c0_21, %c0_22] : memref<128x128xbf16, #tpu.memory_space<vmem>>, vector<128x128xbf16>
    %cst = arith.constant dense<0.000000e+00> : vector<64x128xf32>
    %24 = tpu.matmul %22, %23, %cst {dimension_numbers = #tpu.dot_dimension_numbers<[1], [0], [0], [1], [0, 0, 1, 1], [], []>} : vector<64x128xbf16>, vector<128x128xbf16>, vector<64x128xf32> -> vector<64x128xf32>
    %c0_23 = arith.constant 0 : index
    %c0_24 = arith.constant 0 : index
    %25 = vector.load %arg7[%c0_23, %c0_24] : memref<1x128xf32, #tpu.memory_space<vmem>>, vector<1x128xf32>
    %26 = vector.broadcast %25 : vector<1x128xf32> to vector<64x128xf32>
    %27 = arith.addf %24, %26 : vector<64x128xf32>
    %28 = vector.shape_cast %27 : vector<64x128xf32> to vector<8x8x128xf32>
    %c0_25 = arith.constant 0 : index
    %c0_26 = arith.constant 0 : index
    %c0_27 = arith.constant 0 : index
    %29 = vector.load %arg8[%c0_25, %c0_26, %c0_27] : memref<8x8x128xf32, #tpu.memory_space<vmem>>, vector<8x8x128xf32>
    tpu.vector_store %arg8[%c0_25, %c0_26, %c0_27], %28 {strides = array<i32>} : memref<8x8x128xf32, #tpu.memory_space<vmem>>, vector<8x8x128xf32>,
    return
  }
  func.func @transform_0(%arg0: i32) -> (i32, i32, i32) {
    %c0_i32 = arith.constant 0 : i32
    %c0_i32_0 = arith.constant 0 : i32
    %c0_i32_1 = arith.constant 0 : i32
    return %arg0, %c0_i32, %c0_i32_0 : i32, i32, i32
  }
  func.func @transform_1(%arg0: i32) -> (i32, i32, i32) {
    %c0_i32 = arith.constant 0 : i32
    %c0_i32_0 = arith.constant 0 : i32
    %c0_i32_1 = arith.constant 0 : i32
    %c0_i32_2 = arith.constant 0 : i32
    return %c0_i32, %c0_i32_0, %c0_i32_1 : i32, i32, i32
  }
  func.func @transform_2(%arg0: i32) -> (i32, i32, i32) {
    %c0_i32 = arith.constant 0 : i32
    %c0_i32_0 = arith.constant 0 : i32
    %c0_i32_1 = arith.constant 0 : i32
    %c0_i32_2 = arith.constant 0 : i32
    return %c0_i32, %c0_i32_0, %c0_i32_1 : i32, i32, i32
  }
  func.func @transform_3(%arg0: i32) -> (i32, i32, i32) {
    %c0_i32 = arith.constant 0 : i32
    %c0_i32_0 = arith.constant 0 : i32
    %c0_i32_1 = arith.constant 0 : i32
    %c0_i32_2 = arith.constant 0 : i32
    return %c0_i32, %c0_i32_0, %c0_i32_1 : i32, i32, i32
  }
  func.func @transform_4(%arg0: i32) -> (i32, i32, i32) {
    %c0_i32 = arith.constant 0 : i32
    %c0_i32_0 = arith.constant 0 : i32
    %c0_i32_1 = arith.constant 0 : i32
    %c0_i32_2 = arith.constant 0 : i32
    return %c0_i32, %c0_i32_0, %c0_i32_1 : i32, i32, i32
  }
  func.func @transform_5(%arg0: i32) -> (i32, i32) {
    %c0_i32 = arith.constant 0 : i32
    %c0_i32_0 = arith.constant 0 : i32
    %c0_i32_1 = arith.constant 0 : i32
    return %c0_i32, %c0_i32_0 : i32, i32
  }
  func.func @transform_6(%arg0: i32) -> (i32, i32) {
    %c0_i32 = arith.constant 0 : i32
    %c0_i32_0 = arith.constant 0 : i32
    %c0_i32_1 = arith.constant 0 : i32
    return %c0_i32, %c0_i32_0 : i32, i32
  }
  func.func @transform_7(%arg0: i32) -> (i32, i32, i32) {
    %c0_i32 = arith.constant 0 : i32
    %c0_i32_0 = arith.constant 0 : i32
    %c0_i32_1 = arith.constant 0 : i32
    return %arg0, %c0_i32, %c0_i32_0 : i32, i32, i32
  }
  func.func @transform_8(%arg0: i32) -> (i32, i32, i32) {
    %c0_i32 = arith.constant 0 : i32
    %c0_i32_0 = arith.constant 0 : i32
    %c0_i32_1 = arith.constant 0 : i32
    %c0_i32_2 = arith.constant 0 : i32
    return %c0_i32, %c0_i32_0, %c0_i32_1 : i32, i32, i32
  }
}

</mosaic_0001>

<bundles_post_ra>
// kernel: char_rnn_forward.1
= control target key start
LH: loop header
LB: loop body
LE: loop exit
PB: predicated region body
PF: predicated region fallthrough
CT: control target
= control target key end

     0   :  { %s656_s17 = smov 0   ;;  %s999_s0 = inlined_call_operand.vmem [shape: f32[8,8,128], index: 0, kind: input, shape index: {}]   ;;  %s1000_s1 = inlined_call_operand.vmem [shape: f32[3,8,128], index: 1, kind: input, shape index: {}, may-alias: {1,8}]   ;;  %s1001_s2 = inlined_call_operand.vmem [shape: f32[2,128,128], index: 2, kind: input, shape index: {}]   ;;  %s1002_s3 = inlined_call_operand.vmem [shape: f32[3,128,128], index: 3, kind: input, shape index: {}]   ;;  %s1003_s4 = inlined_call_operand.vmem [shape: f32[3,8,128], index: 4, kind: input, shape index: {}]   ;;  %s1004_s5 = inlined_call_operand.vmem [shape: bf16[128,128], index: 5, kind: input, shape index: {}]   ;;  %s1005_s6 = inlined_call_operand.vmem [shape: f32[1,128], index: 6, kind: input, shape index: {}]   ;;  %s1006_s7 = inlined_call_operand.vmem [shape: f32[8,8,128], index: 7, kind: output, shape index: {0}]   ;;  %s1007_s8 = inlined_call_operand.vmem [shape: f32[3,8,128], index: 8, kind: output, shape index: {1}, may-alias: {1,8}]  }
   0x1   :  { %v32_v0 = vld [vmem:[%s1000_s1] sm:$0xff]   ;;  %v33_v1 = vld [vmem:[%s1000_s1 + $0x8] sm:$0xff]   ;;  %v34_v2 = vld [vmem:[%s1000_s1 + $0x10] sm:$0xff]  }
   0x2   :  { %35 = vst [vmem:[%s1007_s8] sm:$0xff] %v32_v0 }
   0x3   :  { %36 = vst [vmem:[%s1007_s8 + $0x8] sm:$0xff] %v33_v1 }
   0x4   :  { %37 = vst [vmem:[%s1007_s8 + $0x10] sm:$0xff] %v34_v2 }
   0x5 LB: > { %v70_v3 = vld [vmem:[%s1002_s3 + $0x78] sm:$0xff]  ;;  %v69_v4 = vld [vmem:[%s1002_s3 + $0x70] sm:$0xff]  ;;  %v68_v5 = vld [vmem:[%s1002_s3 + $0x68] sm:$0xff]  ;;  %s399_s9 = sshll.u32 %s585_s17, 3  ;;  %s48_s17 = sadd.s32 1, %s585_s17   ;;  %s585_s17 = sphi %s656_s17, %s48_s17   ;;  %v581_v0 = vphi %v32_v0, %v1010_v0   ;;  %v577_v1 = vphi %v33_v1, %v1009_v1   ;;  %v573_v2 = vphi %v34_v2, %v1008_v2  }
   0x6   : > { %71 = vmatpush.msra.mxu0 %v70_v3  ;;  %v67_v6 = vld [vmem:[%s1002_s3 + $0x60] sm:$0xff]  ;;  %v415_v7 = vld [vmem:[%s1002_s3 + $0xf8] sm:$0xff]  ;;  %v414_v8 = vld [vmem:[%s1002_s3 + $0xf0] sm:$0xff]  ;;  %s53_s16 = scalar_lea.vmem %s999_s0, %s399_s9  ;;  %s249_s13 = scalar_lea.vmem [#allocation2], %s399_s9 }
   0x7   : > { %v66_v9 = vld [vmem:[%s1002_s3 + $0x58] sm:$0xff]  ;;  %147 = vmatpush.msra.mxu2 %v415_v7  ;;  %v413_v11 = vld [vmem:[%s1002_s3 + $0xe8] sm:$0xff]  ;;  %v125_v12 = vld [vmem:[%s1001_s2 + $0x70] sm:$0xff]  ;;  %p45_p0 = scmp.ge.s32.totalorder %s48_s17, 8  }
   0x8   : > { %72 = vmatpush.msra.mxu0 %v69_v4  ;;  %v126_v10 = vld [vmem:[%s1001_s2 + $0x78] sm:$0xff]  ;;  %v65_v13 = vld [vmem:[%s1002_s3 + $0x50] sm:$0xff]  ;;  %v124_v14 = vld [vmem:[%s1001_s2 + $0x68] sm:$0xff] }
   0x9   : > { %127 = vmatpush.msra.mxu1 %v126_v10  ;;  %148 = vmatpush.msra.mxu2 %v414_v8  ;;  %v412_v15 = vld [vmem:[%s1002_s3 + $0xe0] sm:$0xff]  ;;  %v64_v16 = vld [vmem:[%s1002_s3 + $0x48] sm:$0xff]  ;;  %v411_v18 = vld [vmem:[%s1002_s3 + $0xd8] sm:$0xff] }
   0xa   : > { %73 = vmatpush.msra.mxu0 %v68_v5  ;;  %v123_v17 = vld [vmem:[%s1001_s2 + $0x60] sm:$0xff]  ;;  %v122_v20 = vld [vmem:[%s1001_s2 + $0x58] sm:$0xff]  ;;  %v410_v21 = vld [vmem:[%s1002_s3 + $0xd0] sm:$0xff] }
   0xb   : > { %128 = vmatpush.msra.mxu1 %v125_v12  ;;  %149 = vmatpush.msra.mxu2 %v413_v11  ;;  %v63_v19 = vld [vmem:[%s1002_s3 + $0x40] sm:$0xff]  ;;  %v62_v22 = vld [vmem:[%s1002_s3 + $0x38] sm:$0xff]  ;;  %v121_v23 = vld [vmem:[%s1001_s2 + $0x50] sm:$0xff] }
   0xc   : > { %74 = vmatpush.msra.mxu0 %v67_v6  ;;  %v409_v24 = vld [vmem:[%s1002_s3 + $0xc8] sm:$0xff]  ;;  %v61_v25 = vld [vmem:[%s1002_s3 + $0x30] sm:$0xff]  ;;  %v408_v27 = vld [vmem:[%s1002_s3 + $0xc0] sm:$0xff] }
   0xd   : > { %129 = vmatpush.msra.mxu1 %v124_v14  ;;  %150 = vmatpush.msra.mxu2 %v412_v15  ;;  %v120_v26 = vld [vmem:[%s1001_s2 + $0x48] sm:$0xff]  ;;  %v119_v29 = vld [vmem:[%s1001_s2 + $0x40] sm:$0xff]  ;;  %v407_v30 = vld [vmem:[%s1002_s3 + $0xb8] sm:$0xff] }
   0xe   : > { %75 = vmatpush.msra.mxu0 %v66_v9  ;;  %v60_v28 = vld [vmem:[%s1002_s3 + $0x28] sm:$0xff]  ;;  %v59_v31 = vld [vmem:[%s1002_s3 + $0x20] sm:$0xff]  ;;  %v118_v32 = vld [vmem:[%s1001_s2 + $0x38] sm:$0xff] }
   0xf   : > { %130 = vmatpush.msra.mxu1 %v123_v17  ;;  %151 = vmatpush.msra.mxu2 %v411_v18  ;;  %v406_v33 = vld [vmem:[%s1002_s3 + $0xb0] sm:$0xff]  ;;  %v58_v34 = vld [vmem:[%s1002_s3 + $0x18] sm:$0xff]  ;;  %v405_v36 = vld [vmem:[%s1002_s3 + $0xa8] sm:$0xff] }
  0x10   : > { %76 = vmatpush.msra.mxu0 %v65_v13  ;;  %v117_v35 = vld [vmem:[%s1001_s2 + $0x30] sm:$0xff]  ;;  %v404_v38 = vld [vmem:[%s1002_s3 + $0xa0] sm:$0xff]  ;;  %v56_v39 = vld [vmem:[%s1002_s3 + $0x8] sm:$0xff] }
  0x11   : > { %131 = vmatpush.msra.mxu1 %v122_v20  ;;  %152 = vmatpush.msra.mxu2 %v410_v21  ;;  %v57_v37 = vld [vmem:[%s1002_s3 + $0x10] sm:$0xff]  ;;  %v403_v40 = vld [vmem:[%s1002_s3 + $0x98] sm:$0xff]  ;;  %v55_v41 = vld [vmem:[%s1002_s3] sm:$0xff] }
  0x12   : > { %77 = vmatpush.msra.mxu0 %v64_v16  ;;  %v116_v42 = vld [vmem:[%s1001_s2 + $0x28] sm:$0xff]  ;;  %v402_v43 = vld [vmem:[%s1002_s3 + $0x90] sm:$0xff]  ;;  %v115_v44 = vld [vmem:[%s1001_s2 + $0x20] sm:$0xff] }
  0x13   : > { %132 = vmatpush.msra.mxu1 %v121_v23  ;;  %153 = vmatpush.msra.mxu2 %v409_v24  ;;  %v401_v45 = vld [vmem:[%s1002_s3 + $0x88] sm:$0xff]  ;;  %v114_v46 = vld [vmem:[%s1001_s2 + $0x18] sm:$0xff]  ;;  %v400_v47 = vld [vmem:[%s1002_s3 + $0x80] sm:$0xff] }
  0x14   : > { %78 = vmatpush.msra.mxu0 %v63_v19  ;;  %v113_v48 = vld [vmem:[%s1001_s2 + $0x10] sm:$0xff]  ;;  %v112_v49 = vld [vmem:[%s1001_s2 + $0x8] sm:$0xff]  ;;  %v111_v50 = vld [vmem:[%s1001_s2] sm:$0xff] }
  0x15   : > { %133 = vmatpush.msra.mxu1 %v120_v26  ;;  %154 = vmatpush.msra.mxu2 %v408_v27  ;;  %v448_v51 = vld [vmem:[%s1001_s2 + $0xf8] sm:$0xff]  ;;  %v447_v52 = vld [vmem:[%s1001_s2 + $0xf0] sm:$0xff]  ;;  %v446_v54 = vld [vmem:[%s1001_s2 + $0xe8] sm:$0xff] }
  0x16   : > { %79 = vmatpush.msra.mxu0 %v62_v22  ;;  %205 = vmatpush.msra.mxu3 %v448_v51  ;;  %v432_v53 = vld [vmem:[%s1002_s3 + $0x178] sm:$0xff]  ;;  %v431_v55 = vld [vmem:[%s1002_s3 + $0x170] sm:$0xff]  ;;  %v430_v56 = vld [vmem:[%s1002_s3 + $0x168] sm:$0xff] }
  0x17   : > { %134 = vmatpush.msra.mxu1 %v119_v29  ;;  %155 = vmatpush.msra.mxu2 %v407_v30  ;;  %v445_v57 = vld [vmem:[%s1001_s2 + $0xe0] sm:$0xff]  ;;  %v444_v59 = vld [vmem:[%s1001_s2 + $0xd8] sm:$0xff]  ;;  %v443_v61 = vld [vmem:[%s1001_s2 + $0xd0] sm:$0xff] }
  0x18   : > { %80 = vmatpush.msra.mxu0 %v61_v25  ;;  %206 = vmatpush.msra.mxu3 %v447_v52  ;;  %v429_v58 = vld [vmem:[%s1002_s3 + $0x160] sm:$0xff]  ;;  %v428_v60 = vld [vmem:[%s1002_s3 + $0x158] sm:$0xff]  ;;  %v427_v62 = vld [vmem:[%s1002_s3 + $0x150] sm:$0xff] }
  0x19   : > { %135 = vmatpush.msra.mxu1 %v118_v32  ;;  %156 = vmatpush.msra.mxu2 %v406_v33  ;;  %v442_v63 = vld [vmem:[%s1001_s2 + $0xc8] sm:$0xff]  ;;  %v440_v3 = vld [vmem:[%s1001_s2 + $0xb8] sm:$0xff]  ;;  %v439_v4 = vld [vmem:[%s1001_s2 + $0xb0] sm:$0xff] }
  0x1a   : > { %81 = vmatpush.msra.mxu0 %v60_v28  ;;  %207 = vmatpush.msra.mxu3 %v446_v54  ;;  %v54_v5 = vld [vmem:[%s53_s16] sm:$0xff]  ;;  %v438_v11 = vld [vmem:[%s1001_s2 + $0xa8] sm:$0xff]  ;;  %v424_v14 = vld [vmem:[%s1002_s3 + $0x138] sm:$0xff] }
  0x1b   : > { %136 = vmatpush.msra.mxu1 %v117_v35  ;;  %157 = vmatpush.msra.mxu2 %v405_v36  ;;  %v91_v7 = vld [vmem:[%s1003_s4] sm:$0xff]  ;;  %v436_v15 = vld [vmem:[%s1001_s2 + $0x98] sm:$0xff]  ;;  %v423_v16 = vld [vmem:[%s1002_s3 + $0x130] sm:$0xff] }
  0x1c   : > { %82 = vmatpush.msra.mxu0 %v59_v31  ;;  %208 = vmatpush.msra.mxu3 %v445_v57  ;;  %v425_v12 = vld [vmem:[%s1002_s3 + $0x140] sm:$0xff]  ;;  %v435_v17 = vld [vmem:[%s1001_s2 + $0x90] sm:$0xff]  ;;  %v422_v18 = vld [vmem:[%s1002_s3 + $0x128] sm:$0xff] }
  0x1d   : > { %158 = vmatpush.msra.mxu2 %v404_v38  ;;  %137 = vmatpush.msra.mxu1 %v116_v42  ;;  %v437_v13 = vld [vmem:[%s1001_s2 + $0xa0] sm:$0xff]  ;;  %v434_v19 = vld [vmem:[%s1001_s2 + $0x88] sm:$0xff]  ;;  %v420_v22 = vld [vmem:[%s1002_s3 + $0x118] sm:$0xff] }
  0x1e   : > { %83 = vmatpush.msra.mxu0 %v58_v34  ;;  %209 = vmatpush.msra.mxu3 %v444_v59  ;;  %v421_v20 = vld [vmem:[%s1002_s3 + $0x120] sm:$0xff]  ;;  %v419_v23 = vld [vmem:[%s1002_s3 + $0x110] sm:$0xff]  ;;  %v418_v24 = vld [vmem:[%s1002_s3 + $0x108] sm:$0xff] }
  0x1f   : > { %159 = vmatpush.msra.mxu2 %v403_v40  ;;  %138 = vmatpush.msra.mxu1 %v115_v44  ;;  %v433_v21 = vld [vmem:[%s1001_s2 + $0x80] sm:$0xff]  ;;  %v416_v28 = vld [vmem:[%s1003_s4 + $0x8] sm:$0xff]  ;;  %v449_v34 = vld [vmem:[%s1003_s4 + $0x10] sm:$0xff] }
  0x20   : > { %84 = vmatpush.msra.mxu0 %v57_v37  ;;  %210 = vmatpush.msra.mxu3 %v443_v61  ;;  %v417_v25 = vld [vmem:[%s1002_s3 + $0x100] sm:$0xff]  ;;  %v491_v37 = vld [vmem:[%s1004_s5 + $0x38] sm:$0xff] (%p45_p0)  ;;  %v490_v38 = vld [vmem:[%s1004_s5 + $0x30] sm:$0xff] (%p45_p0) }
  0x21   : > { %160 = vmatpush.msra.mxu2 %v402_v43  ;;  %139 = vmatpush.msra.mxu1 %v114_v46  ;;  %v488_v40 = vld [vmem:[%s1004_s5 + $0x20] sm:$0xff] (%p45_p0)  ;;  %v486_v42 = vld [vmem:[%s1004_s5 + $0x10] sm:$0xff] (%p45_p0)  ;;  %v485_v43 = vld [vmem:[%s1004_s5 + $0x8] sm:$0xff] (%p45_p0) }
  0x22   : > { %85 = vmatpush.msra.mxu0 %v56_v39  ;;  %211 = vmatpush.msra.mxu3 %v442_v63  ;;  %v489_v39 = vld [vmem:[%s1004_s5 + $0x28] sm:$0xff] (%p45_p0)  ;;  %v484_v44 = vld [vmem:[%s1004_s5] sm:$0xff] (%p45_p0) }
  0x23   : > { %161 = vmatpush.msra.mxu2 %v401_v45  ;;  %140 = vmatpush.msra.mxu1 %v113_v48  ;;  %v554_v57 = vld [vmem:[%s1005_s6] ss:$0 sm:$0xff] (%p45_p0) }
  0x24   : > { %86 = vmatpush.msra.mxu0 %v55_v41  ;;  %v487_v41 = vld [vmem:[%s1004_s5 + $0x18] sm:$0xff] (%p45_p0) }
  0x25   : > { %87 = vmatmul.f32.vlgmr.msra.gmra.mxu0 %v581_v0  ;;  %162 = vmatpush.msra.mxu2 %v400_v47  ;;  %v426_v0 = vld [vmem:[%s1002_s3 + $0x148] sm:$0xff] }
  0x26   : > { %163 = vmatmul.f32.vlgmr.msra.gmra.mxu2 %v577_v1  ;;  %141 = vmatpush.msra.mxu1 %v112_v49  ;;  %v441_v1 = vld [vmem:[%s1001_s2 + $0xc0] sm:$0xff] }
  0x27   : > { %225 = vmatpush.msrb.mxu0 %v432_v53  ;;  %212 = vmatpush.msra.mxu3 %v441_v1 }
  0x28   : > { %142 = vmatpush.msra.mxu1 %v111_v50  ;;  %493 = vmatpush.bf16.msra.mxu2 (%p45_p0), %v491_v37 }
  0x29   : > { %226 = vmatpush.msrb.mxu0 %v431_v55  ;;  %213 = vmatpush.msra.mxu3 %v440_v3 }
  0x2b   : > { %227 = vmatpush.msrb.mxu0 %v430_v56  ;;  %214 = vmatpush.msra.mxu3 %v439_v4 }
  0x2c   :  { %496 = vmatpush.bf16.msra.mxu2 (%p45_p0), %v490_v38 }
  0x2d   : > { %228 = vmatpush.msrb.mxu0 %v429_v58  ;;  %215 = vmatpush.msra.mxu3 %v438_v11 }
  0x2f   : > { %229 = vmatpush.msrb.mxu0 %v428_v60  ;;  %216 = vmatpush.msra.mxu3 %v437_v13 }
  0x30   :  { %499 = vmatpush.bf16.msra.mxu2 (%p45_p0), %v489_v39 }
  0x31   : > { %230 = vmatpush.msrb.mxu0 %v427_v62  ;;  %217 = vmatpush.msra.mxu3 %v436_v15 }
  0x33   : > { %231 = vmatpush.msrb.mxu0 %v426_v0  ;;  %218 = vmatpush.msra.mxu3 %v435_v17 }
  0x34   :  { %502 = vmatpush.bf16.msra.mxu2 (%p45_p0), %v488_v40 }
  0x35   : > { %232 = vmatpush.msrb.mxu0 %v425_v12  ;;  %219 = vmatpush.msra.mxu3 %v434_v19 }
  0x37   : > { %233 = vmatpush.msrb.mxu0 %v424_v14  ;;  %220 = vmatpush.msra.mxu3 %v433_v21 }
  0x38   :  { %505 = vmatpush.bf16.msra.mxu2 (%p45_p0), %v487_v41 }
  0x39   : > { %234 = vmatpush.msrb.mxu0 %v423_v16 }
  0x3b   : > { %235 = vmatpush.msrb.mxu0 %v422_v18 }
  0x3c   :  { %508 = vmatpush.bf16.msra.mxu2 (%p45_p0), %v486_v42 }
  0x3d   : > { %236 = vmatpush.msrb.mxu0 %v421_v20 }
  0x3f   : > { %237 = vmatpush.msrb.mxu0 %v420_v22 }
  0x40   :  { %511 = vmatpush.bf16.msra.mxu2 (%p45_p0), %v485_v43 }
  0x41   : > { %238 = vmatpush.msrb.mxu0 %v419_v23 }
  0x43   : > { %239 = vmatpush.msrb.mxu0 %v418_v24 }
  0x44   :  { %514 = vmatpush.bf16.msra.mxu2 (%p45_p0), %v484_v44 }
  0x45   : > { %240 = vmatpush.msrb.mxu0 %v417_v25 }
  0x46   : > { %241 = vmatmul.f32.vlgmr.msrb.gmra.mxu0 %v573_v2 }
  0x47   :  { %334 = vmatpush.bf16.msra.mxu0 (%p45_p0), %v491_v37 }
  0x4b   :  { %335 = vmatpush.bf16.msra.mxu0 (%p45_p0), %v490_v38 }
  0x4f   :  { %336 = vmatpush.bf16.msra.mxu0 (%p45_p0), %v489_v39 }
  0x53   :  { %337 = vmatpush.bf16.msra.mxu0 (%p45_p0), %v488_v40 }
  0x57   :  { %338 = vmatpush.bf16.msra.mxu0 (%p45_p0), %v487_v41 }
  0x5b   :  { %339 = vmatpush.bf16.msra.mxu0 (%p45_p0), %v486_v42 }
  0x5f   :  { %340 = vmatpush.bf16.msra.mxu0 (%p45_p0), %v485_v43 }
  0x63   :  { %341 = vmatpush.bf16.msra.mxu0 (%p45_p0), %v484_v44 }
  0xa2   : > { %v88_v6 = vpop.f32.mrf.mxu0 }
  0xa3   : > { %v89_v8 = vadd.f32 %v88_v6, %v54_v5 }
  0xa5   : > { %v92_v9 = vadd.f32 %v91_v7, %v89_v8 }
  0xa7   : > { %548 = vtanh.f32 %v92_v9 }
  0xa9   : > { %v164_v26 = vpop.f32.mrf.mxu2 }
  0xad   : > { %v549_v10 = vpop.eup %548  }
  0xae   : > { %143 = vmatmul.f32.vlgmr.msra.gmra.mxu1 %v549_v10  ;;  %v1010_v0 = vmov %v549_v10  ;;  %251 = vst [vmem:[%s1007_s8] sm:$0xff] (%p45_p0), %v549_v10 }
  0xaf   :  { %492 = vmatpush.bf16.msra.mxu1 (%p45_p0), %v491_v37 }
  0xb3   :  { %495 = vmatpush.bf16.msra.mxu1 (%p45_p0), %v490_v38 }
  0xb7   :  { %498 = vmatpush.bf16.msra.mxu1 (%p45_p0), %v489_v39 }
  0xbb   :  { %501 = vmatpush.bf16.msra.mxu1 (%p45_p0), %v488_v40 }
  0xbf   :  { %504 = vmatpush.bf16.msra.mxu1 (%p45_p0), %v487_v41 }
  0xc3   : > { %v242_v32 = vpop.f32.mrf.mxu0  ;;  %507 = vmatpush.bf16.msra.mxu1 (%p45_p0), %v486_v42 }
  0xc7   :  { %510 = vmatpush.bf16.msra.mxu1 (%p45_p0), %v485_v43 }
  0xcb   :  { %513 = vmatpush.bf16.msra.mxu1 (%p45_p0), %v484_v44 }
 0x12b   : > { %v144_v27 = vpop.f32.mrf.mxu1 }
 0x12c   : > { %v165_v29 = vadd.f32 %v164_v26, %v144_v27 }
 0x12e   : > { %v169_v30 = vadd.f32 %v416_v28, %v165_v29 }
 0x130   : > { %550 = vtanh.f32 %v169_v30 }
 0x136   : > { %v551_v31 = vpop.eup %550  }
 0x137   : > { %221 = vmatmul.f32.vlgmr.msra.gmra.mxu3 %v551_v31  ;;  %v1009_v1 = vmov %v551_v31  ;;  %450 = vst [vmem:[%s1007_s8 + $0x8] sm:$0xff] (%p45_p0), %v551_v31 }
 0x138   :  { %494 = vmatpush.bf16.msra.mxu3 (%p45_p0), %v491_v37 }
 0x13c   :  { %497 = vmatpush.bf16.msra.mxu3 (%p45_p0), %v490_v38 }
 0x140   :  { %500 = vmatpush.bf16.msra.mxu3 (%p45_p0), %v489_v39 }
 0x144   :  { %503 = vmatpush.bf16.msra.mxu3 (%p45_p0), %v488_v40 }
 0x148   :  { %506 = vmatpush.bf16.msra.mxu3 (%p45_p0), %v487_v41 }
 0x14c   :  { %509 = vmatpush.bf16.msra.mxu3 (%p45_p0), %v486_v42 }
 0x150   :  { %512 = vmatpush.bf16.msra.mxu3 (%p45_p0), %v485_v43 }
 0x154   :  { %515 = vmatpush.bf16.msra.mxu3 (%p45_p0), %v484_v44 }
 0x1ba   : > { %v222_v33 = vpop.f32.mrf.mxu3 }
 0x1bb   : > { %v243_v35 = vadd.f32 %v242_v32, %v222_v33 }
 0x1bd   : > { %v247_v2 = vadd.f32 %v449_v34, %v243_v35 }
 0x1bf   : > { %552 = vtanh.f32 %v247_v2 }
 0x1c2   :  { %47 = sbr.rel (!%p45_p0) target bundleno = 5 (0x5), region = 76 }
 0x1c5   : > { %v553_v36 = vpop.eup %552  }
 0x1c6   : > { %250 = vst [vmem:[%s249_s13] sm:$0xff] %v553_v36  ;;  %v1008_v2 = vmov %v553_v36 }
 0x1c7   :  { %451 = vst [vmem:[%s1007_s8 + $0x10] sm:$0xff] %v553_v36 }
 0x1cd   :  { %v254_v45 = vld [vmem:[#allocation2] sm:$0xff]  ;;  %v255_v46 = vld [vmem:[#allocation2 + $0x8] sm:$0xff]  ;;  %v256_v47 = vld [vmem:[#allocation2 + $0x10] sm:$0xff] }
 0x1ce   :  { %v257_v48 = vld [vmem:[#allocation2 + $0x18] sm:$0xff]  ;;  %v258_v49 = vld [vmem:[#allocation2 + $0x20] sm:$0xff]  ;;  %v259_v50 = vld [vmem:[#allocation2 + $0x28] sm:$0xff]  ;;  %v262_v53 = vpack.c.bf16 %v255_v46, %v254_v45 }
 0x1cf   :  { %v260_v51 = vld [vmem:[#allocation2 + $0x30] sm:$0xff]  ;;  %v261_v52 = vld [vmem:[#allocation2 + $0x38] sm:$0xff]  ;;  %v263_v54 = vpack.c.bf16 %v257_v48, %v256_v47  ;;  %v264_v55 = vpack.c.bf16 %v259_v50, %v258_v49 }
 0x1d0   :  { %v265_v56 = vpack.c.bf16 %v261_v52, %v260_v51  ;;  %342 = vmatmul.bf16.vlgmr.msra.gmra.mxu0 %v262_v53 }
 0x1d1   :  { %347 = vmatmul.bf16.vlgmr.msra.gmra.mxu1 %v263_v54  ;;  %352 = vmatmul.bf16.vlgmr.msra.gmra.mxu2 %v264_v55 }
 0x1d2   :  { %357 = vmatmul.bf16.vlgmr.msra.gmra.mxu3 %v265_v56 }
 0x24d   :  { %v343_v58 = vpop.f32.mrf.mxu0 }
 0x24e   :  { %v348_v59 = vpop.f32.mrf.mxu1  ;;  %v344_v60 = vadd.f32 %v554_v57, %v343_v58 }
 0x24f   :  { %v349_v61 = vadd.f32 %v554_v57, %v348_v59 }
 0x250   :  { %363 = vst [vmem:[%s1006_s7] sm:$0xff] %v344_v60 }
 0x251   :  { %365 = vst [vmem:[%s1006_s7 + $0x10] sm:$0xff] %v349_v61 }
 0x254   :  { %v353_v62 = vpop.f32.mrf.mxu2 }
 0x255   :  { %v358_v63 = vpop.f32.mrf.mxu3  ;;  %v354_v0 = vadd.f32 %v554_v57, %v353_v62  ;;  %v345_v3 = vpop.f32.mrf.mxu0 }
 0x256   :  { %v359_v1 = vadd.f32 %v554_v57, %v358_v63  ;;  %v350_v4 = vpop.f32.mrf.mxu1  ;;  %v346_v5 = vadd.f32 %v554_v57, %v345_v3 }
 0x257   :  { %v351_v6 = vadd.f32 %v554_v57, %v350_v4  ;;  %367 = vst [vmem:[%s1006_s7 + $0x20] sm:$0xff] %v354_v0 }
 0x258   :  { %369 = vst [vmem:[%s1006_s7 + $0x30] sm:$0xff] %v359_v1 }
 0x259   :  { %364 = vst [vmem:[%s1006_s7 + $0x8] sm:$0xff] %v346_v5 }
 0x25a   :  { %366 = vst [vmem:[%s1006_s7 + $0x18] sm:$0xff] %v351_v6 }
 0x25c   :  { %v355_v7 = vpop.f32.mrf.mxu2 }
 0x25d   :  { %v360_v8 = vpop.f32.mrf.mxu3  ;;  %v356_v9 = vadd.f32 %v554_v57, %v355_v7 }
 0x25e   :  { %v361_v10 = vadd.f32 %v554_v57, %v360_v8 }
 0x25f   :  { %368 = vst [vmem:[%s1006_s7 + $0x28] sm:$0xff] %v356_v9 }
 0x260   :  { %370 = vst [vmem:[%s1006_s7 + $0x38] sm:$0xff] %v361_v10 }

</bundles_post_ra>
